<compile_context>
chip_gen: v6e
topology: v6e:2x2x1
jax: 0.10.0
libtpu: 0.0.40
codegen_flags: <defaults>
</compile_context>

<pallas_src>
import functools

import jax
import jax.numpy as jnp
from jax.experimental import pallas as pl
from jax.experimental.pallas import tpu as pltpu

_LANE = 128
_SUBLANE = 8


def _round_up(x: int, m: int) -> int:
    return ((x + m - 1) // m) * m


def _fused_mlp_kernel(*refs, num_layers: int):
    """Fused MLP: all layers in one kernel body.

    refs = (x_ref, w1_ref, b1_ref, ..., wN_ref, bN_ref, o_ref)
      x_ref : [TB, Din]            VMEM
      wi_ref: [Din_i, Dout_i]      VMEM (pre-transposed, hidden dims lane-padded)
      bi_ref: [1, Dout_i]          VMEM
      o_ref : [TB, Dout]           VMEM (true output width)
    Intermediate activations live in vregs / compiler-managed VMEM only.
    """
    x_ref = refs[0]
    o_ref = refs[-1]
    h = x_ref[...]
    for i in range(num_layers):
        w_ref = refs[1 + 2 * i]
        b_ref = refs[2 + 2 * i]
        h = jnp.dot(h, w_ref[...], preferred_element_type=jnp.float32)
        h = h + b_ref[...]  # broadcast bias over batch rows
        if i != num_layers - 1:
            h = jnp.maximum(h, 0.0)
    o_ref[...] = h.astype(o_ref.dtype)


def init_params(key, nn_architecture):
    """Deterministic init mirroring nn.Linear: weight [out, in], bias [out]."""
    params = []
    for i in range(len(nn_architecture) - 1):
        din, dout = nn_architecture[i], nn_architecture[i + 1]
        key, wk, bk = jax.random.split(key, 3)
        bound = 1.0 / jnp.sqrt(din)
        w = jax.random.uniform(wk, (dout, din), jnp.float32, -bound, bound)
        b = jax.random.uniform(bk, (dout,), jnp.float32, -bound, bound)
        params.append((w, b))
    return params


def prepare_params(raw_params, *, dtype=jnp.float32):
    """One-time kernel-layout prep (NOT in the per-call hot path).

    Transposes each weight to [in, out] and zero-pads hidden feature dims up
    to multiples of 128 lanes. The final layer's output width is kept at its
    true size (lean HBM writeback). Optionally casts to bf16 for v6e/v7x.
    """
    num_layers = len(raw_params)
    prepped = []
    prev_width = raw_params[0][0].shape[1]  # true input width; x itself is not padded
    for i, (w, b) in enumerate(raw_params):
        dout, din = w.shape
        in_pad = prev_width
        out_pad = dout if i == num_layers - 1 else _round_up(dout, _LANE)
        w_t = jnp.zeros((in_pad, out_pad), dtype).at[:din, :dout].set(
            w.T.astype(dtype))
        b_p = jnp.zeros((1, out_pad), dtype).at[:, :dout].set(
            b.reshape(1, -1).astype(dtype))
        prepped.append((w_t, b_p))
        prev_width = out_pad
    return prepped


def neural_net_forward(x, params, *, batch_tile: int = 512):
    """Fused-MLP forward: one pallas_call, batch-tiled 1-D 'parallel' grid."""
    num_layers = len(params)
    batch, din = x.shape
    assert din == params[0][0].shape[0], "x width must match first layer in-dim"
    dout = params[-1][0].shape[1]

    # --- batch tiling -------------------------------------------------------
    if batch <= batch_tile:
        # Tiny batch: one full-batch block (full-extent blocks are always
        # legal; splitting only adds per-step overhead on single-TC chips).
        tb = batch
        padded_batch = batch
    else:
        tb = _round_up(batch_tile, _SUBLANE)
        padded_batch = _round_up(batch, tb)  # cdiv-style grid via row padding
    grid_size = padded_batch // tb

    x_in = x
    if padded_batch != batch:
        x_in = jnp.pad(x, ((0, padded_batch - batch), (0, 0)))

    # --- specs --------------------------------------------------------------
    in_specs = [pl.BlockSpec((tb, din), lambda i: (i, 0))]
    flat_inputs = [x_in]
    for (w_t, b) in params:
        # Weights/biases are small: keep the full arrays resident and
        # replicated into every grid step's block.
        in_specs.append(pl.BlockSpec(w_t.shape, lambda i: (0, 0)))
        in_specs.append(pl.BlockSpec(b.shape, lambda i: (0, 0)))
        flat_inputs.append(w_t)
        flat_inputs.append(b)

    # --- VMEM budget: set an explicit limit only if we'd bust the smallest
    # default scoped limit (v5e: 16 MiB). -------------------------------------
    act_itemsize = jnp.dtype(x.dtype).itemsize
    max_width = max(w.shape[1] for w, _ in params)
    est_bytes = (
        2 * tb * (din + dout) * act_itemsize                 # double-buffered in/out tiles
        + 2 * sum(w.size * w.dtype.itemsize + b.size * b.dtype.itemsize
                  for w, b in params)                        # (double-buffered) weights
        + 2 * tb * max_width * 4                             # live f32 intermediates
    )
    vmem_limit = None
    if est_bytes > 12 * 1024 * 1024:
        vmem_limit = min(2 * est_bytes + (4 << 20), 60 << 20)  # headroom, <= v7x physical

    kernel = functools.partial(_fused_mlp_kernel, num_layers=num_layers)
    out = pl.pallas_call(
        kernel,
        out_shape=jax.ShapeDtypeStruct((padded_batch, dout), x.dtype),
        grid=(grid_size,),
        in_specs=in_specs,
        out_specs=pl.BlockSpec((tb, dout), lambda i: (i, 0)),
        compiler_params=pltpu.CompilerParams(
            dimension_semantics=("parallel",),
            vmem_limit_bytes=vmem_limit,
        ),
    )(*flat_inputs)

    if padded_batch != batch:
        out = out[:batch]
    return out


def neural_net_reference(x, raw_params):
    """Pure-JAX reference mirroring the PyTorch forward exactly."""
    num_layers = len(raw_params)
    for n, (w, b) in enumerate(raw_params):
        x = x @ w.T + b
        if n != num_layers - 1:
            x = jnp.maximum(x, 0.0)
    return x


if __name__ == "__main__":
    # NN_architecture: [input_size, hidden1, hidden2, output_size]
    nn_architecture = [32, 64, 48, 16]

    key = jax.random.PRNGKey(0)
    key, xk_small, xk_big = jax.random.split(key, 3)

    raw_params = init_params(key, nn_architecture)
    params = prepare_params(raw_params)  # one-time transpose + lane padding

    # Path 1: small batch -> single full-batch block.
    x_small = jax.random.normal(xk_small, (256, nn_architecture[0]), jnp.float32)
    out_small = jax.block_until_ready(neural_net_forward(x_small, params))
    ref_small = neural_net_reference(x_small, raw_params)
    assert out_small.shape == (256, nn_architecture[-1])
    assert jnp.allclose(out_small, ref_small, atol=1e-4, rtol=1e-4), \
        "mismatch vs reference (small batch)"

    # Path 2: larger, non-divisible batch -> 512-row tiles, padded parallel grid.
    x_big = jax.random.normal(xk_big, (1100, nn_architecture[0]), jnp.float32)
    out_big = jax.block_until_ready(
        neural_net_forward(x_big, params, batch_tile=512))
    ref_big = neural_net_reference(x_big, raw_params)
    assert out_big.shape == (1100, nn_architecture[-1])
    assert jnp.allclose(out_big, ref_big, atol=1e-4, rtol=1e-4), \
        "mismatch vs reference (tiled batch)"

    print("KERNEL_OK")
</pallas_src>

<mosaic_0001>
module attributes {stable_mosaic.version = 11 : i64} {
  func.func @_fused_mlp_kernel(%arg0: i32, %arg1: memref<256x32xf32, #tpu.memory_space<vmem>>, %arg2: memref<32x128xf32, #tpu.memory_space<vmem>>, %arg3: memref<1x128xf32, #tpu.memory_space<vmem>>, %arg4: memref<128x128xf32, #tpu.memory_space<vmem>>, %arg5: memref<1x128xf32, #tpu.memory_space<vmem>>, %arg6: memref<128x16xf32, #tpu.memory_space<vmem>>, %arg7: memref<1x16xf32, #tpu.memory_space<vmem>>, %arg8: memref<256x16xf32, #tpu.memory_space<vmem>>) attributes {dimension_semantics = [#tpu.dimension_semantics<parallel>], iteration_bounds = array<i64: 1>, scalar_prefetch = 0 : i64, scratch_operands = 0 : i64, tpu.core_type = #tpu.core_type<tc>, window_params = [{transform_indices = @transform_0, window_bounds = array<i64: 256, 32>}, {pipeline_mode = #tpu.pipeline_mode<synchronous>, transform_indices = @transform_1, window_bounds = array<i64: 32, 128>}, {pipeline_mode = #tpu.pipeline_mode<synchronous>, transform_indices = @transform_2, window_bounds = array<i64: 1, 128>}, {pipeline_mode = #tpu.pipeline_mode<synchronous>, transform_indices = @transform_3, window_bounds = array<i64: 128, 128>}, {pipeline_mode = #tpu.pipeline_mode<synchronous>, transform_indices = @transform_4, window_bounds = array<i64: 1, 128>}, {pipeline_mode = #tpu.pipeline_mode<synchronous>, transform_indices = @transform_5, window_bounds = array<i64: 128, 16>}, {pipeline_mode = #tpu.pipeline_mode<synchronous>, transform_indices = @transform_6, window_bounds = array<i64: 1, 16>}, {transform_indices = @transform_7, window_bounds = array<i64: 256, 16>}]} {
    %c0 = arith.constant 0 : index
    %c0_0 = arith.constant 0 : index
    %0 = vector.load %arg1[%c0, %c0_0] : memref<256x32xf32, #tpu.memory_space<vmem>>, vector<256x32xf32>
    %c0_1 = arith.constant 0 : index
    %c0_2 = arith.constant 0 : index
    %1 = vector.load %arg2[%c0_1, %c0_2] : memref<32x128xf32, #tpu.memory_space<vmem>>, vector<32x128xf32>
    %cst = arith.constant dense<0.000000e+00> : vector<256x128xf32>
    %2 = tpu.matmul %0, %1, %cst {dimension_numbers = #tpu.dot_dimension_numbers<[1], [0], [0], [1], [0, 0, 1, 1], [], []>} : vector<256x32xf32>, vector<32x128xf32>, vector<256x128xf32> -> vector<256x128xf32>
    %c0_3 = arith.constant 0 : index
    %c0_4 = arith.constant 0 : index
    %3 = vector.load %arg3[%c0_3, %c0_4] : memref<1x128xf32, #tpu.memory_space<vmem>>, vector<1x128xf32>
    %4 = vector.broadcast %3 : vector<1x128xf32> to vector<256x128xf32>
    %5 = arith.addf %2, %4 : vector<256x128xf32>
    %cst_5 = arith.constant 0.000000e+00 : f32
    %6 = vector.broadcast %cst_5 : f32 to vector<256x128xf32>
    %7 = arith.maximumf %5, %6 : vector<256x128xf32>
    %c0_6 = arith.constant 0 : index
    %c0_7 = arith.constant 0 : index
    %8 = vector.load %arg4[%c0_6, %c0_7] : memref<128x128xf32, #tpu.memory_space<vmem>>, vector<128x128xf32>
    %cst_8 = arith.constant dense<0.000000e+00> : vector<256x128xf32>
    %9 = tpu.matmul %7, %8, %cst_8 {dimension_numbers = #tpu.dot_dimension_numbers<[1], [0], [0], [1], [0, 0, 1, 1], [], []>} : vector<256x128xf32>, vector<128x128xf32>, vector<256x128xf32> -> vector<256x128xf32>
    %c0_9 = arith.constant 0 : index
    %c0_10 = arith.constant 0 : index
    %10 = vector.load %arg5[%c0_9, %c0_10] : memref<1x128xf32, #tpu.memory_space<vmem>>, vector<1x128xf32>
    %11 = vector.broadcast %10 : vector<1x128xf32> to vector<256x128xf32>
    %12 = arith.addf %9, %11 : vector<256x128xf32>
    %cst_11 = arith.constant 0.000000e+00 : f32
    %13 = vector.broadcast %cst_11 : f32 to vector<256x128xf32>
    %14 = arith.maximumf %12, %13 : vector<256x128xf32>
    %c0_12 = arith.constant 0 : index
    %c0_13 = arith.constant 0 : index
    %15 = vector.load %arg6[%c0_12, %c0_13] : memref<128x16xf32, #tpu.memory_space<vmem>>, vector<128x16xf32>
    %cst_14 = arith.constant dense<0.000000e+00> : vector<256x16xf32>
    %16 = tpu.matmul %14, %15, %cst_14 {dimension_numbers = #tpu.dot_dimension_numbers<[1], [0], [0], [1], [0, 0, 1, 1], [], []>} : vector<256x128xf32>, vector<128x16xf32>, vector<256x16xf32> -> vector<256x16xf32>
    %c0_15 = arith.constant 0 : index
    %c0_16 = arith.constant 0 : index
    %17 = vector.load %arg7[%c0_15, %c0_16] : memref<1x16xf32, #tpu.memory_space<vmem>>, vector<1x16xf32>
    %18 = vector.broadcast %17 : vector<1x16xf32> to vector<256x16xf32>
    %19 = arith.addf %16, %18 : vector<256x16xf32>
    %c0_17 = arith.constant 0 : index
    %c0_18 = arith.constant 0 : index
    %20 = vector.load %arg8[%c0_17, %c0_18] : memref<256x16xf32, #tpu.memory_space<vmem>>, vector<256x16xf32>
    tpu.vector_store %arg8[%c0_17, %c0_18], %19 {strides = array<i32>} : memref<256x16xf32, #tpu.memory_space<vmem>>, vector<256x16xf32>,
    return
  }
  func.func @transform_0(%arg0: i32) -> (i32, i32) {
    %c0_i32 = arith.constant 0 : i32
    %c0_i32_0 = arith.constant 0 : i32
    return %arg0, %c0_i32 : i32, i32
  }
  func.func @transform_1(%arg0: i32) -> (i32, i32) {
    %c0_i32 = arith.constant 0 : i32
    %c0_i32_0 = arith.constant 0 : i32
    %c0_i32_1 = arith.constant 0 : i32
    return %c0_i32, %c0_i32_0 : i32, i32
  }
  func.func @transform_2(%arg0: i32) -> (i32, i32) {
    %c0_i32 = arith.constant 0 : i32
    %c0_i32_0 = arith.constant 0 : i32
    %c0_i32_1 = arith.constant 0 : i32
    return %c0_i32, %c0_i32_0 : i32, i32
  }
  func.func @transform_3(%arg0: i32) -> (i32, i32) {
    %c0_i32 = arith.constant 0 : i32
    %c0_i32_0 = arith.constant 0 : i32
    %c0_i32_1 = arith.constant 0 : i32
    return %c0_i32, %c0_i32_0 : i32, i32
  }
  func.func @transform_4(%arg0: i32) -> (i32, i32) {
    %c0_i32 = arith.constant 0 : i32
    %c0_i32_0 = arith.constant 0 : i32
    %c0_i32_1 = arith.constant 0 : i32
    return %c0_i32, %c0_i32_0 : i32, i32
  }
  func.func @transform_5(%arg0: i32) -> (i32, i32) {
    %c0_i32 = arith.constant 0 : i32
    %c0_i32_0 = arith.constant 0 : i32
    %c0_i32_1 = arith.constant 0 : i32
    return %c0_i32, %c0_i32_0 : i32, i32
  }
  func.func @transform_6(%arg0: i32) -> (i32, i32) {
    %c0_i32 = arith.constant 0 : i32
    %c0_i32_0 = arith.constant 0 : i32
    %c0_i32_1 = arith.constant 0 : i32
    return %c0_i32, %c0_i32_0 : i32, i32
  }
  func.func @transform_7(%arg0: i32) -> (i32, i32) {
    %c0_i32 = arith.constant 0 : i32
    %c0_i32_0 = arith.constant 0 : i32
    return %arg0, %c0_i32 : i32, i32
  }
}

</mosaic_0001>

<bundles_post_ra>
// kernel: tpu_custom_call.1
= control target key start
LH: loop header
LB: loop body
LE: loop exit
PB: predicated region body
PF: predicated region fallthrough
CT: control target
= control target key end

     0   :  { %vm69_vm0 = vcmask 261120   ;;  %vm951_vm1 = vcmask 130048   ;;  %s1903_s1 = inlined_call_operand.vmem [shape: f32[32,128], index: 1, kind: input, shape index: {}]   ;;  %s1904_s0 = inlined_call_operand.vmem [shape: f32[256,32], index: 0, kind: input, shape index: {}]   ;;  %s1905_s3 = inlined_call_operand.vmem [shape: f32[128,128], index: 3, kind: input, shape index: {}]   ;;  %s1906_s5 = inlined_call_operand.vmem [shape: f32[128,16], index: 5, kind: input, shape index: {}]   ;;  %s1907_s2 = inlined_call_operand.vmem [shape: f32[1,128], index: 2, kind: input, shape index: {}]   ;;  %s1908_s4 = inlined_call_operand.vmem [shape: f32[1,128], index: 4, kind: input, shape index: {}]   ;;  %s1909_s6 = inlined_call_operand.vmem [shape: f32[1,16], index: 6, kind: input, shape index: {}]   ;;  %s1910_s7 = inlined_call_operand.vmem [shape: f32[256,16], index: 7, kind: output, shape index: {}]  }
   0x1   :  { %v61_v0 = vld [vmem:[%s1903_s1 + $0x18] sm:$0xff]  ;;  %v60_v1 = vld [vmem:[%s1903_s1 + $0x10] sm:$0xff]  ;;  %v26_v2 = vld [vmem:[%s1904_s0] sm:$0xff] }
   0x2   :  { %1155 = vmatprep.subr.mxu0 %v61_v0  ;;  %1371 = vmatprep.subr.mxu1 %v61_v0  ;;  %v59_v3 = vld [vmem:[%s1903_s1 + $0x8] sm:$0xff]  ;;  %v58_v4 = vld [vmem:[%s1903_s1] sm:$0xff]  ;;  %v28_v6 = vld [vmem:[%s1904_s0 + $0x10] sm:$0xff] }
   0x3   :  { %1156 = vmatpush3.msra.mxu0 %v61_v0  ;;  %1163 = vmatprep.mubr.msk.f32.mxu0 %vm69_vm0, %v26_v2  ;;  %v27_v5 = vld [vmem:[%s1904_s0 + $0x8] sm:$0xff]  ;;  %v42_v7 = vld [vmem:[%s1904_s0 + $0x80] sm:$0xff]  ;;  %v44_v9 = vld [vmem:[%s1904_s0 + $0x90] sm:$0xff] }
   0x4   :  { %1157 = vmatprep.subr.mxu0 %v60_v1  ;;  %1375 = vmatpush3.msra.mxu1 %v61_v0  ;;  %v43_v8 = vld [vmem:[%s1904_s0 + $0x88] sm:$0xff]  ;;  %v29_v10 = vld [vmem:[%s1904_s0 + $0x18] sm:$0xff]  ;;  %v30_v11 = vld [vmem:[%s1904_s0 + $0x20] sm:$0xff] }
   0x5   :  { %1158 = vmatpush3.msra.mxu0 %v60_v1  ;;  %1372 = vmatprep.subr.mxu1 %v60_v1  ;;  %v45_v12 = vld [vmem:[%s1904_s0 + $0x98] sm:$0xff]  ;;  %v437_v14 = vld [vmem:[%s1905_s3 + $0x70] sm:$0xff]  ;;  %v46_v15 = vld [vmem:[%s1904_s0 + $0xa0] sm:$0xff] }
   0x6   :  { %1159 = vmatprep.subr.mxu0 %v59_v3  ;;  %1376 = vmatpush3.msra.mxu1 %v60_v1  ;;  %v438_v13 = vld [vmem:[%s1905_s3 + $0x78] sm:$0xff]  ;;  %v31_v16 = vld [vmem:[%s1904_s0 + $0x28] sm:$0xff]  ;;  %v32_v18 = vld [vmem:[%s1904_s0 + $0x30] sm:$0xff] }
   0x7   :  { %1160 = vmatpush3.msra.mxu0 %v59_v3  ;;  %1373 = vmatprep.subr.mxu1 %v59_v3  ;;  %v436_v17 = vld [vmem:[%s1905_s3 + $0x68] sm:$0xff]  ;;  %v435_v20 = vld [vmem:[%s1905_s3 + $0x60] sm:$0xff]  ;;  %v48_v21 = vld [vmem:[%s1904_s0 + $0xb0] sm:$0xff] }
   0x8   :  { %1161 = vmatprep.subr.mxu0 %v58_v4  ;;  %1377 = vmatpush3.msra.mxu1 %v59_v3  ;;  %v47_v19 = vld [vmem:[%s1904_s0 + $0xa8] sm:$0xff]  ;;  %v33_v22 = vld [vmem:[%s1904_s0 + $0x38] sm:$0xff]  ;;  %v34_v24 = vld [vmem:[%s1904_s0 + $0x40] sm:$0xff] }
   0x9   :  { %1162 = vmatpush3.msra.mxu0 %v58_v4  ;;  %1374 = vmatprep.subr.mxu1 %v58_v4  ;;  %v434_v23 = vld [vmem:[%s1905_s3 + $0x58] sm:$0xff]  ;;  %v433_v26 = vld [vmem:[%s1905_s3 + $0x50] sm:$0xff]  ;;  %v50_v27 = vld [vmem:[%s1904_s0 + $0xc0] sm:$0xff] }
   0xa   :  { %1164 = vmatmul.mubr.msk.f32.vlgmr.msra.gmra.mxu0 %vm69_vm0, %v27_v5  ;;  %1378 = vmatpush3.msra.mxu1 %v58_v4  ;;  %v49_v25 = vld [vmem:[%s1904_s0 + $0xb8] sm:$0xff]  ;;  %v35_v28 = vld [vmem:[%s1904_s0 + $0x48] sm:$0xff]  ;;  %v36_v30 = vld [vmem:[%s1904_s0 + $0x50] sm:$0xff] }
   0xb   :  { %1166 = vmatprep.mubr.msk.f32.mxu0 %vm69_vm0, %v28_v6  ;;  %1187 = vmatprep.mubr.msk.f32.mxu1 %vm69_vm0, %v42_v7  ;;  %v432_v29 = vld [vmem:[%s1905_s3 + $0x48] sm:$0xff]  ;;  %v431_v32 = vld [vmem:[%s1905_s3 + $0x40] sm:$0xff]  ;;  %v52_v33 = vld [vmem:[%s1904_s0 + $0xd0] sm:$0xff] }
   0xc   :  { %1188 = vmatmul.mubr.msk.f32.vlgmr.msra.gmra.mxu1 %vm69_vm0, %v43_v8  ;;  %1211 = vmatprep.subr.mxu1 %v438_v13  ;;  %v51_v31 = vld [vmem:[%s1904_s0 + $0xc8] sm:$0xff]  ;;  %v37_v34 = vld [vmem:[%s1904_s0 + $0x58] sm:$0xff]  ;;  %v38_v36 = vld [vmem:[%s1904_s0 + $0x60] sm:$0xff] }
   0xd   :  { %1190 = vmatprep.mubr.msk.f32.mxu1 %vm69_vm0, %v44_v9  ;;  %1212 = vmatpush3.msra.mxu1 %v438_v13  ;;  %v430_v35 = vld [vmem:[%s1905_s3 + $0x38] sm:$0xff]  ;;  %v429_v38 = vld [vmem:[%s1905_s3 + $0x30] sm:$0xff]  ;;  %v54_v39 = vld [vmem:[%s1904_s0 + $0xe0] sm:$0xff] }
   0xe   :  { %1167 = vmatmul.mubr.msk.f32.gmra.mxu0 %vm69_vm0, %v29_v10  ;;  %1213 = vmatprep.subr.mxu1 %v437_v14  ;;  %v53_v37 = vld [vmem:[%s1904_s0 + $0xd8] sm:$0xff]  ;;  %v39_v40 = vld [vmem:[%s1904_s0 + $0x68] sm:$0xff]  ;;  %v40_v42 = vld [vmem:[%s1904_s0 + $0x70] sm:$0xff] }
   0xf   :  { %1169 = vmatprep.mubr.msk.f32.mxu0 %vm69_vm0, %v30_v11  ;;  %1214 = vmatpush3.msra.mxu1 %v437_v14  ;;  %v428_v41 = vld [vmem:[%s1905_s3 + $0x28] sm:$0xff]  ;;  %v427_v44 = vld [vmem:[%s1905_s3 + $0x20] sm:$0xff]  ;;  %v56_v45 = vld [vmem:[%s1904_s0 + $0xf0] sm:$0xff] }
  0x10   :  { %1191 = vmatmul.mubr.msk.f32.gmra.mxu1 %vm69_vm0, %v45_v12  ;;  %1215 = vmatprep.subr.mxu1 %v436_v17  ;;  %v55_v43 = vld [vmem:[%s1904_s0 + $0xe8] sm:$0xff]  ;;  %v41_v46 = vld [vmem:[%s1904_s0 + $0x78] sm:$0xff]  ;;  %v425_v49 = vld [vmem:[%s1905_s3 + $0x10] sm:$0xff] }
  0x11   :  { %1193 = vmatprep.mubr.msk.f32.mxu1 %vm69_vm0, %v46_v15  ;;  %1216 = vmatpush3.msra.mxu1 %v436_v17  ;;  %v426_v47 = vld [vmem:[%s1905_s3 + $0x18] sm:$0xff]  ;;  %v424_v50 = vld [vmem:[%s1905_s3 + $0x8] sm:$0xff]  ;;  %v423_v51 = vld [vmem:[%s1905_s3] sm:$0xff] }
  0x12   :  { %1170 = vmatmul.mubr.msk.f32.gmra.mxu0 %vm69_vm0, %v31_v16  ;;  %1217 = vmatprep.subr.mxu1 %v435_v20  ;;  %v57_v48 = vld [vmem:[%s1904_s0 + $0xf8] sm:$0xff]  ;;  %v717_v53 = vld [vmem:[%s1906_s5 + $0x70] sm:$0xff]  ;;  %v716_v54 = vld [vmem:[%s1906_s5 + $0x68] sm:$0xff] }
  0x13   :  { %1172 = vmatprep.mubr.msk.f32.mxu0 %vm69_vm0, %v32_v18  ;;  %1218 = vmatpush3.msra.mxu1 %v435_v20  ;;  %v718_v52 = vld [vmem:[%s1906_s5 + $0x78] sm:$0xff]  ;;  %v715_v55 = vld [vmem:[%s1906_s5 + $0x60] sm:$0xff]  ;;  %v713_v57 = vld [vmem:[%s1906_s5 + $0x50] sm:$0xff] }
  0x14   :  { %1194 = vmatmul.mubr.msk.f32.gmra.mxu1 %vm69_vm0, %v47_v19  ;;  %1219 = vmatprep.subr.mxu1 %v434_v23  ;;  %v714_v56 = vld [vmem:[%s1906_s5 + $0x58] sm:$0xff]  ;;  %v712_v58 = vld [vmem:[%s1906_s5 + $0x48] sm:$0xff]  ;;  %v711_v59 = vld [vmem:[%s1906_s5 + $0x40] sm:$0xff] }
  0x15   :  { %1196 = vmatprep.mubr.msk.f32.mxu1 %vm69_vm0, %v48_v21  ;;  %1220 = vmatpush3.msra.mxu1 %v434_v23  ;;  %v710_v60 = vld [vmem:[%s1906_s5 + $0x38] sm:$0xff]  ;;  %v709_v61 = vld [vmem:[%s1906_s5 + $0x30] sm:$0xff]  ;;  %v708_v62 = vld [vmem:[%s1906_s5 + $0x28] sm:$0xff] }
  0x16   :  { %1173 = vmatmul.mubr.msk.f32.gmra.mxu0 %vm69_vm0, %v33_v22  ;;  %1221 = vmatprep.subr.mxu1 %v433_v26  ;;  %v707_v63 = vld [vmem:[%s1906_s5 + $0x20] sm:$0xff]  ;;  %v706_v0 = vld [vmem:[%s1906_s5 + $0x18] sm:$0xff] }
  0x17   :  { %1175 = vmatprep.mubr.msk.f32.mxu0 %vm69_vm0, %v34_v24  ;;  %1222 = vmatpush3.msra.mxu1 %v433_v26  ;;  %v1649_v1 = vld [vmem:[%s1907_s2] ss:$0 sm:$0xff] }
  0x18   :  { %1197 = vmatmul.mubr.msk.f32.gmra.mxu1 %vm69_vm0, %v49_v25  ;;  %1223 = vmatprep.subr.mxu1 %v432_v29 }
  0x19   :  { %1199 = vmatprep.mubr.msk.f32.mxu1 %vm69_vm0, %v50_v27  ;;  %1224 = vmatpush3.msra.mxu1 %v432_v29 }
  0x1a   :  { %1176 = vmatmul.mubr.msk.f32.gmra.mxu0 %vm69_vm0, %v35_v28  ;;  %1225 = vmatprep.subr.mxu1 %v431_v32 }
  0x1b   :  { %1178 = vmatprep.mubr.msk.f32.mxu0 %vm69_vm0, %v36_v30  ;;  %1226 = vmatpush3.msra.mxu1 %v431_v32 }
  0x1c   :  { %1200 = vmatmul.mubr.msk.f32.gmra.mxu1 %vm69_vm0, %v51_v31  ;;  %1227 = vmatprep.subr.mxu1 %v430_v35 }
  0x1d   :  { %1202 = vmatprep.mubr.msk.f32.mxu1 %vm69_vm0, %v52_v33  ;;  %1228 = vmatpush3.msra.mxu1 %v430_v35 }
  0x1e   :  { %1179 = vmatmul.mubr.msk.f32.gmra.mxu0 %vm69_vm0, %v37_v34  ;;  %1229 = vmatprep.subr.mxu1 %v429_v38 }
  0x1f   :  { %1181 = vmatprep.mubr.msk.f32.mxu0 %vm69_vm0, %v38_v36  ;;  %1230 = vmatpush3.msra.mxu1 %v429_v38 }
  0x20   :  { %1203 = vmatmul.mubr.msk.f32.gmra.mxu1 %vm69_vm0, %v53_v37  ;;  %1231 = vmatprep.subr.mxu1 %v428_v41 }
  0x21   :  { %1205 = vmatprep.mubr.msk.f32.mxu1 %vm69_vm0, %v54_v39  ;;  %1232 = vmatpush3.msra.mxu1 %v428_v41 }
  0x22   :  { %1182 = vmatmul.mubr.msk.f32.gmra.mxu0 %vm69_vm0, %v39_v40  ;;  %1233 = vmatprep.subr.mxu1 %v427_v44 }
  0x23   :  { %1184 = vmatprep.mubr.msk.f32.mxu0 %vm69_vm0, %v40_v42  ;;  %1234 = vmatpush3.msra.mxu1 %v427_v44 }
  0x24   :  { %1206 = vmatmul.mubr.msk.f32.gmra.mxu1 %vm69_vm0, %v55_v43  ;;  %1235 = vmatprep.subr.mxu1 %v426_v47 }
  0x25   :  { %1208 = vmatprep.mubr.msk.f32.mxu1 %vm69_vm0, %v56_v45  ;;  %1236 = vmatpush3.msra.mxu1 %v426_v47 }
  0x26   :  { %1185 = vmatmul.mubr.msk.f32.gmra.mxu0 %vm69_vm0, %v41_v46  ;;  %1237 = vmatprep.subr.mxu1 %v425_v49 }
  0x27   :  { %1238 = vmatpush3.msra.mxu1 %v425_v49  ;;  %1291 = vmatprep.subr.mxu0 %v718_v52 }
  0x28   :  { %1209 = vmatmul.mubr.msk.f32.gmra.mxu1 %vm69_vm0, %v57_v48  ;;  %1239 = vmatprep.subr.mxu1 %v424_v50 }
  0x29   :  { %1240 = vmatpush3.msra.mxu1 %v424_v50  ;;  %1292 = vmatpush3.msra.mxu0 %v718_v52 }
  0x2a   :  { %1241 = vmatprep.subr.mxu1 %v423_v51  ;;  %1293 = vmatprep.subr.mxu0 %v717_v53 }
  0x2b   :  { %1242 = vmatpush3.msra.mxu1 %v423_v51  ;;  %1294 = vmatpush3.msra.mxu0 %v717_v53 }
  0x2c   :  { %1295 = vmatprep.subr.mxu0 %v716_v54 }
  0x2d   :  { %1296 = vmatpush3.msra.mxu0 %v716_v54 }
  0x2e   :  { %1297 = vmatprep.subr.mxu0 %v715_v55 }
  0x2f   :  { %1298 = vmatpush3.msra.mxu0 %v715_v55 }
  0x30   :  { %1299 = vmatprep.subr.mxu0 %v714_v56 }
  0x31   :  { %1300 = vmatpush3.msra.mxu0 %v714_v56 }
  0x32   :  { %1301 = vmatprep.subr.mxu0 %v713_v57 }
  0x33   :  { %1302 = vmatpush3.msra.mxu0 %v713_v57 }
  0x34   :  { %1303 = vmatprep.subr.mxu0 %v712_v58 }
  0x35   :  { %1304 = vmatpush3.msra.mxu0 %v712_v58 }
  0x36   :  { %1305 = vmatprep.subr.mxu0 %v711_v59 }
  0x37   :  { %1306 = vmatpush3.msra.mxu0 %v711_v59 }
  0x38   :  { %1307 = vmatprep.subr.mxu0 %v710_v60 }
  0x39   :  { %1308 = vmatpush3.msra.mxu0 %v710_v60 }
  0x3a   :  { %1309 = vmatprep.subr.mxu0 %v709_v61 }
  0x3b   :  { %1310 = vmatpush3.msra.mxu0 %v709_v61 }
  0x3c   :  { %1311 = vmatprep.subr.mxu0 %v708_v62 }
  0x3d   :  { %1312 = vmatpush3.msra.mxu0 %v708_v62 }
  0x3e   :  { %1313 = vmatprep.subr.mxu0 %v707_v63 }
  0x3f   :  { %1314 = vmatpush3.msra.mxu0 %v707_v63 }
  0x40   :  { %1315 = vmatprep.subr.mxu0 %v706_v0 }
  0x41   :  { %1316 = vmatpush3.msra.mxu0 %v706_v0 }
  0xca   :  { %v1165_v2 = vpop.f32.mrf.mxu0 }
  0xcb   :  { %v238_v3 = vadd.f32 %v1165_v2, %v1649_v1 }
  0xcc   :  { %v232_v4 = vpop.f32.mrf.mxu0  ;;  %v1652_v5 = vpop.f32.mrf.mxu1 }
  0xcd   :  { %v233_v6 = vadd.f32 %v1649_v1, %v232_v4  ;;  %v392_v10 = vmax.f32 %v238_v3, 0.0  ;;  %v318_v63 = vadd.f32 %v1652_v5, %v1649_v1 }
  0xce   :  { %v1168_v7 = vpop.f32.mrf.mxu0  ;;  %v312_v8 = vpop.f32.mrf.mxu1 }
  0xcf   :  { %v391_v9 = vmax.f32 %v233_v6, 0.0  ;;  %v248_v11 = vadd.f32 %v1168_v7, %v1649_v1  ;;  %v313_v53 = vadd.f32 %v1649_v1, %v312_v8  ;;  %v408_v4 = vmax.f32 %v318_v63, 0.0 }
  0xd0   :  { %v242_v12 = vpop.f32.mrf.mxu0  ;;  %v1656_v13 = vpop.f32.mrf.mxu1 }
  0xd1   :  { %v243_v14 = vadd.f32 %v1649_v1, %v242_v12  ;;  %1243 = vmatprep.mubr.f32.mxu1 %v391_v9  ;;  %v394_v18 = vmax.f32 %v248_v11, 0.0  ;;  %v407_v60 = vmax.f32 %v313_v53, 0.0  ;;  %v328_v6 = vadd.f32 %v1656_v13, %v1649_v1 }
  0xd2   :  { %v1171_v15 = vpop.f32.mrf.mxu0  ;;  %1244 = vmatmul.mubr.f32.vlgmr.msra.gmra.mxu1 %v392_v10  ;;  %v322_v16 = vpop.f32.mrf.mxu1 }
  0xd3   :  { %v393_v17 = vmax.f32 %v243_v14, 0.0  ;;  %v258_v19 = vadd.f32 %v1171_v15, %v1649_v1  ;;  %v323_v61 = vadd.f32 %v1649_v1, %v322_v16  ;;  %v410_v10 = vmax.f32 %v328_v6, 0.0 }
  0xd4   :  { %v252_v20 = vpop.f32.mrf.mxu0  ;;  %v1660_v21 = vpop.f32.mrf.mxu1 }
  0xd5   :  { %v253_v22 = vadd.f32 %v1649_v1, %v252_v20  ;;  %1246 = vmatprep.mubr.f32.mxu1 %v393_v17  ;;  %v396_v25 = vmax.f32 %v258_v19, 0.0  ;;  %v409_v2 = vmax.f32 %v323_v61, 0.0  ;;  %v338_v5 = vadd.f32 %v1660_v21, %v1649_v1 }
  0xd6   :  { %v1174_v23 = vpop.f32.mrf.mxu0  ;;  %1247 = vmatmul.mubr.f32.gmra.mxu1 %v394_v18  ;;  %v332_v28 = vpop.f32.mrf.mxu1 }
  0xd7   :  { %v395_v24 = vmax.f32 %v253_v22, 0.0  ;;  %v268_v26 = vadd.f32 %v1174_v23, %v1649_v1  ;;  %v333_v3 = vadd.f32 %v1649_v1, %v332_v28  ;;  %v412_v15 = vmax.f32 %v338_v5, 0.0 }
  0xd8   :  { %v262_v27 = vpop.f32.mrf.mxu0  ;;  %v1198_v35 = vpop.f32.mrf.mxu1 }
  0xd9   :  { %v263_v29 = vadd.f32 %v1649_v1, %v262_v27  ;;  %1249 = vmatprep.mubr.f32.mxu1 %v395_v24  ;;  %v398_v32 = vmax.f32 %v268_v26, 0.0  ;;  %v411_v8 = vmax.f32 %v333_v3, 0.0  ;;  %v348_v16 = vadd.f32 %v1198_v35, %v1649_v1  ;;  %v705_v35 = vld [vmem:[%s1906_s5 + $0x10] sm:$0xff] }
  0xda   :  { %v1177_v30 = vpop.f32.mrf.mxu0  ;;  %1250 = vmatmul.mubr.f32.gmra.mxu1 %v396_v25  ;;  %v342_v42 = vpop.f32.mrf.mxu1  ;;  %1317 = vmatprep.subr.mxu0 %v705_v35 }
  0xdb   :  { %v397_v31 = vmax.f32 %v263_v29, 0.0  ;;  %v278_v33 = vadd.f32 %v1177_v30, %v1649_v1  ;;  %v343_v9 = vadd.f32 %v1649_v1, %v342_v42  ;;  %v414_v19 = vmax.f32 %v348_v16, 0.0  ;;  %1318 = vmatpush3.msra.mxu0 %v705_v35 }
  0xdc   :  { %v272_v34 = vpop.f32.mrf.mxu0  ;;  %v1201_v49 = vpop.f32.mrf.mxu1 }
  0xdd   :  { %v273_v36 = vadd.f32 %v1649_v1, %v272_v34  ;;  %1252 = vmatprep.mubr.f32.mxu1 %v397_v31  ;;  %v400_v39 = vmax.f32 %v278_v33, 0.0  ;;  %v413_v12 = vmax.f32 %v343_v9, 0.0  ;;  %v358_v20 = vadd.f32 %v1201_v49, %v1649_v1 }
  0xde   :  { %v1180_v37 = vpop.f32.mrf.mxu0  ;;  %1253 = vmatmul.mubr.f32.gmra.mxu1 %v398_v32  ;;  %v352_v57 = vpop.f32.mrf.mxu1 }
  0xdf   :  { %v399_v38 = vmax.f32 %v273_v36, 0.0  ;;  %v288_v40 = vadd.f32 %v1180_v37, %v1649_v1  ;;  %v353_v14 = vadd.f32 %v1649_v1, %v352_v57  ;;  %v416_v24 = vmax.f32 %v358_v20, 0.0  ;;  %v704_v36 = vld [vmem:[%s1906_s5 + $0x8] sm:$0xff]  ;;  %v1704_v37 = vld [vmem:[%s1908_s4] ss:$0 sm:$0xff] }
  0xe0   :  { %v282_v41 = vpop.f32.mrf.mxu0  ;;  %v1204_v0 = vpop.f32.mrf.mxu1  ;;  %1319 = vmatprep.subr.mxu0 %v704_v36 }
  0xe1   :  { %v283_v43 = vadd.f32 %v1649_v1, %v282_v41  ;;  %1255 = vmatprep.mubr.f32.mxu1 %v399_v38  ;;  %v402_v46 = vmax.f32 %v288_v40, 0.0  ;;  %v415_v17 = vmax.f32 %v353_v14, 0.0  ;;  %v368_v25 = vadd.f32 %v1204_v0, %v1649_v1  ;;  %1320 = vmatpush3.msra.mxu0 %v704_v36 }
  0xe2   :  { %v1183_v44 = vpop.f32.mrf.mxu0  ;;  %1256 = vmatmul.mubr.f32.gmra.mxu1 %v400_v39  ;;  %v362_v7 = vpop.f32.mrf.mxu1 }
  0xe3   :  { %v401_v45 = vmax.f32 %v283_v43, 0.0  ;;  %v298_v47 = vadd.f32 %v1183_v44, %v1649_v1  ;;  %v363_v18 = vadd.f32 %v1649_v1, %v362_v7  ;;  %v418_v29 = vmax.f32 %v368_v25, 0.0 }
  0xe4   :  { %v292_v48 = vpop.f32.mrf.mxu0  ;;  %v1207_v11 = vpop.f32.mrf.mxu1 }
  0xe5   :  { %v293_v50 = vadd.f32 %v1649_v1, %v292_v48  ;;  %1258 = vmatprep.mubr.f32.mxu1 %v401_v45  ;;  %v404_v54 = vmax.f32 %v298_v47, 0.0  ;;  %v417_v21 = vmax.f32 %v363_v18, 0.0  ;;  %v378_v30 = vadd.f32 %v1207_v11, %v1649_v1 }
  0xe6   :  { %v1186_v51 = vpop.f32.mrf.mxu0  ;;  %1259 = vmatmul.mubr.f32.gmra.mxu1 %v402_v46  ;;  %v372_v13 = vpop.f32.mrf.mxu1 }
  0xe7   :  { %v403_v52 = vmax.f32 %v293_v50, 0.0  ;;  %v308_v55 = vadd.f32 %v1186_v51, %v1649_v1  ;;  %v373_v23 = vadd.f32 %v1649_v1, %v372_v13  ;;  %v420_v32 = vmax.f32 %v378_v30, 0.0 }
  0xe8   :  { %v302_v56 = vpop.f32.mrf.mxu0  ;;  %v1210_v22 = vpop.f32.mrf.mxu1 }
  0xe9   :  { %v303_v58 = vadd.f32 %v1649_v1, %v302_v56  ;;  %1261 = vmatprep.mubr.f32.mxu1 %v403_v52  ;;  %v406_v62 = vmax.f32 %v308_v55, 0.0  ;;  %v419_v27 = vmax.f32 %v373_v23, 0.0  ;;  %v388_v33 = vadd.f32 %v1210_v22, %v1649_v1 }
  0xea   :  { %1262 = vmatmul.mubr.f32.gmra.mxu1 %v404_v54  ;;  %v382_v26 = vpop.f32.mrf.mxu1 }
  0xeb   :  { %v405_v59 = vmax.f32 %v303_v58, 0.0  ;;  %v383_v28 = vadd.f32 %v1649_v1, %v382_v26  ;;  %v422_v34 = vmax.f32 %v388_v33, 0.0  ;;  %v703_v1 = vld [vmem:[%s1906_s5] sm:$0xff] }
  0xec   :  { %1321 = vmatprep.subr.mxu0 %v703_v1 }
  0xed   :  { %1264 = vmatprep.mubr.f32.mxu1 %v405_v59  ;;  %v421_v31 = vmax.f32 %v383_v28, 0.0  ;;  %1322 = vmatpush3.msra.mxu0 %v703_v1 }
  0xee   :  { %1265 = vmatmul.mubr.f32.gmra.mxu1 %v406_v62 }
  0xef   :  { %1267 = vmatprep.mubr.f32.mxu1 %v407_v60 }
  0xf2   :  { %1268 = vmatmul.mubr.f32.gmra.mxu1 %v408_v4 }
  0xf3   :  { %1270 = vmatprep.mubr.f32.mxu1 %v409_v2 }
  0xf6   :  { %1271 = vmatmul.mubr.f32.gmra.mxu1 %v410_v10 }
  0xf7   :  { %1273 = vmatprep.mubr.f32.mxu1 %v411_v8 }
  0xfa   :  { %1274 = vmatmul.mubr.f32.gmra.mxu1 %v412_v15 }
  0xfb   :  { %1276 = vmatprep.mubr.f32.mxu1 %v413_v12 }
  0xfe   :  { %1277 = vmatmul.mubr.f32.gmra.mxu1 %v414_v19 }
  0xff   :  { %1279 = vmatprep.mubr.f32.mxu1 %v415_v17 }
 0x102   :  { %1280 = vmatmul.mubr.f32.gmra.mxu1 %v416_v24 }
 0x103   :  { %1282 = vmatprep.mubr.f32.mxu1 %v417_v21 }
 0x106   :  { %1283 = vmatmul.mubr.f32.gmra.mxu1 %v418_v29 }
 0x107   :  { %1285 = vmatprep.mubr.f32.mxu1 %v419_v27 }
 0x10a   :  { %1286 = vmatmul.mubr.f32.gmra.mxu1 %v420_v32 }
 0x10b   :  { %1288 = vmatprep.mubr.f32.mxu1 %v421_v31 }
 0x10e   :  { %1289 = vmatmul.mubr.f32.gmra.mxu1 %v422_v34 }
 0x192   :  { %v1245_v38 = vpop.f32.mrf.mxu1 }
 0x193   :  { %v518_v39 = vadd.f32 %v1245_v38, %v1704_v37 }
 0x194   :  { %v512_v40 = vpop.f32.mrf.mxu1 }
 0x195   :  { %v513_v41 = vadd.f32 %v1704_v37, %v512_v40  ;;  %v672_v44 = vmax.f32 %v518_v39, 0.0 }
 0x196   :  { %v1248_v42 = vpop.f32.mrf.mxu1 }
 0x197   :  { %v671_v43 = vmax.f32 %v513_v41, 0.0  ;;  %v528_v45 = vadd.f32 %v1248_v42, %v1704_v37 }
 0x198   :  { %v522_v46 = vpop.f32.mrf.mxu1 }
 0x199   :  { %v523_v47 = vadd.f32 %v1704_v37, %v522_v46  ;;  %1323 = vmatprep.mubr.f32.mxu0 %v671_v43  ;;  %v674_v50 = vmax.f32 %v528_v45, 0.0 }
 0x19a   :  { %v1251_v48 = vpop.f32.mrf.mxu1  ;;  %1324 = vmatmul.mubr.f32.vlgmr.msra.gmra.mxu0 %v672_v44 }
 0x19b   :  { %v673_v49 = vmax.f32 %v523_v47, 0.0  ;;  %v538_v51 = vadd.f32 %v1251_v48, %v1704_v37 }
 0x19c   :  { %v532_v52 = vpop.f32.mrf.mxu1 }
 0x19d   :  { %v533_v53 = vadd.f32 %v1704_v37, %v532_v52  ;;  %1326 = vmatprep.mubr.f32.mxu0 %v673_v49  ;;  %v676_v56 = vmax.f32 %v538_v51, 0.0 }
 0x19e   :  { %v1254_v54 = vpop.f32.mrf.mxu1  ;;  %1327 = vmatmul.mubr.f32.gmra.mxu0 %v674_v50 }
 0x19f   :  { %v675_v55 = vmax.f32 %v533_v53, 0.0  ;;  %v548_v57 = vadd.f32 %v1254_v54, %v1704_v37 }
 0x1a0   :  { %v542_v58 = vpop.f32.mrf.mxu1 }
 0x1a1   :  { %v543_v59 = vadd.f32 %v1704_v37, %v542_v58  ;;  %1329 = vmatprep.mubr.f32.mxu0 %v675_v55  ;;  %v678_v62 = vmax.f32 %v548_v57, 0.0 }
 0x1a2   :  { %v1257_v60 = vpop.f32.mrf.mxu1  ;;  %1330 = vmatmul.mubr.f32.gmra.mxu0 %v676_v56 }
 0x1a3   :  { %v677_v61 = vmax.f32 %v543_v59, 0.0  ;;  %v558_v63 = vadd.f32 %v1257_v60, %v1704_v37 }
 0x1a4   :  { %v552_v0 = vpop.f32.mrf.mxu1 }
 0x1a5   :  { %v553_v2 = vadd.f32 %v1704_v37, %v552_v0  ;;  %1332 = vmatprep.mubr.f32.mxu0 %v677_v61  ;;  %v680_v6 = vmax.f32 %v558_v63, 0.0 }
 0x1a6   :  { %v1260_v3 = vpop.f32.mrf.mxu1  ;;  %1333 = vmatmul.mubr.f32.gmra.mxu0 %v678_v62 }
 0x1a7   :  { %v679_v4 = vmax.f32 %v553_v2, 0.0  ;;  %v568_v7 = vadd.f32 %v1260_v3, %v1704_v37 }
 0x1a8   :  { %v562_v8 = vpop.f32.mrf.mxu1 }
 0x1a9   :  { %v563_v9 = vadd.f32 %v1704_v37, %v562_v8  ;;  %1335 = vmatprep.mubr.f32.mxu0 %v679_v4  ;;  %v682_v11 = vmax.f32 %v568_v7, 0.0 }
 0x1aa   :  { %v1263_v10 = vpop.f32.mrf.mxu1  ;;  %1336 = vmatmul.mubr.f32.gmra.mxu0 %v680_v6 }
 0x1ab   :  { %v681_v5 = vmax.f32 %v563_v9, 0.0  ;;  %v578_v12 = vadd.f32 %v1263_v10, %v1704_v37  ;;  %v1741_v9 = vld [vmem:[%s1909_s6] ss:$0 sm:$0xff] }
 0x1ac   :  { %v572_v14 = vpop.f32.mrf.mxu1 }
 0x1ad   :  { %v573_v15 = vadd.f32 %v1704_v37, %v572_v14  ;;  %1338 = vmatprep.mubr.f32.mxu0 %v681_v5  ;;  %v684_v17 = vmax.f32 %v578_v12, 0.0 }
 0x1ae   :  { %v1266_v16 = vpop.f32.mrf.mxu1  ;;  %1339 = vmatmul.mubr.f32.gmra.mxu0 %v682_v11 }
 0x1af   :  { %v683_v13 = vmax.f32 %v573_v15, 0.0  ;;  %v588_v18 = vadd.f32 %v1266_v16, %v1704_v37 }
 0x1b0   :  { %v582_v19 = vpop.f32.mrf.mxu1 }
 0x1b1   :  { %v583_v20 = vadd.f32 %v1704_v37, %v582_v19  ;;  %1341 = vmatprep.mubr.f32.mxu0 %v683_v13  ;;  %v686_v23 = vmax.f32 %v588_v18, 0.0 }
 0x1b2   :  { %v1269_v22 = vpop.f32.mrf.mxu1  ;;  %1342 = vmatmul.mubr.f32.gmra.mxu0 %v684_v17 }
 0x1b3   :  { %v685_v21 = vmax.f32 %v583_v20, 0.0  ;;  %v598_v24 = vadd.f32 %v1269_v22, %v1704_v37 }
 0x1b4   :  { %v592_v25 = vpop.f32.mrf.mxu1 }
 0x1b5   :  { %v593_v26 = vadd.f32 %v1704_v37, %v592_v25  ;;  %1344 = vmatprep.mubr.f32.mxu0 %v685_v21  ;;  %v688_v29 = vmax.f32 %v598_v24, 0.0 }
 0x1b6   :  { %v1272_v27 = vpop.f32.mrf.mxu1  ;;  %1345 = vmatmul.mubr.f32.gmra.mxu0 %v686_v23 }
 0x1b7   :  { %v687_v28 = vmax.f32 %v593_v26, 0.0  ;;  %v608_v30 = vadd.f32 %v1272_v27, %v1704_v37 }
 0x1b8   :  { %v602_v31 = vpop.f32.mrf.mxu1 }
 0x1b9   :  { %v603_v32 = vadd.f32 %v1704_v37, %v602_v31  ;;  %1347 = vmatprep.mubr.f32.mxu0 %v687_v28  ;;  %v690_v35 = vmax.f32 %v608_v30, 0.0 }
 0x1ba   :  { %v1275_v33 = vpop.f32.mrf.mxu1  ;;  %1348 = vmatmul.mubr.f32.gmra.mxu0 %v688_v29 }
 0x1bb   :  { %v689_v34 = vmax.f32 %v603_v32, 0.0  ;;  %v618_v36 = vadd.f32 %v1275_v33, %v1704_v37 }
 0x1bc   :  { %v612_v1 = vpop.f32.mrf.mxu1 }
 0x1bd   :  { %v613_v38 = vadd.f32 %v1704_v37, %v612_v1  ;;  %1350 = vmatprep.mubr.f32.mxu0 %v689_v34  ;;  %v692_v41 = vmax.f32 %v618_v36, 0.0 }
 0x1be   :  { %v1278_v39 = vpop.f32.mrf.mxu1  ;;  %1351 = vmatmul.mubr.f32.gmra.mxu0 %v690_v35 }
 0x1bf   :  { %v691_v40 = vmax.f32 %v613_v38, 0.0  ;;  %v628_v42 = vadd.f32 %v1278_v39, %v1704_v37 }
 0x1c0   :  { %v622_v43 = vpop.f32.mrf.mxu1 }
 0x1c1   :  { %v623_v44 = vadd.f32 %v1704_v37, %v622_v43  ;;  %1353 = vmatprep.mubr.f32.mxu0 %v691_v40  ;;  %v694_v47 = vmax.f32 %v628_v42, 0.0 }
 0x1c2   :  { %v1281_v45 = vpop.f32.mrf.mxu1  ;;  %1354 = vmatmul.mubr.f32.gmra.mxu0 %v692_v41 }
 0x1c3   :  { %v693_v46 = vmax.f32 %v623_v44, 0.0  ;;  %v638_v48 = vadd.f32 %v1281_v45, %v1704_v37 }
 0x1c4   :  { %v632_v49 = vpop.f32.mrf.mxu1 }
 0x1c5   :  { %v633_v50 = vadd.f32 %v1704_v37, %v632_v49  ;;  %1356 = vmatprep.mubr.f32.mxu0 %v693_v46  ;;  %v696_v53 = vmax.f32 %v638_v48, 0.0 }
 0x1c6   :  { %v1284_v51 = vpop.f32.mrf.mxu1  ;;  %1357 = vmatmul.mubr.f32.gmra.mxu0 %v694_v47 }
 0x1c7   :  { %v695_v52 = vmax.f32 %v633_v50, 0.0  ;;  %v648_v54 = vadd.f32 %v1284_v51, %v1704_v37 }
 0x1c8   :  { %v642_v55 = vpop.f32.mrf.mxu1 }
 0x1c9   :  { %v643_v56 = vadd.f32 %v1704_v37, %v642_v55  ;;  %1359 = vmatprep.mubr.f32.mxu0 %v695_v52  ;;  %v698_v59 = vmax.f32 %v648_v54, 0.0 }
 0x1ca   :  { %v1287_v57 = vpop.f32.mrf.mxu1  ;;  %1360 = vmatmul.mubr.f32.gmra.mxu0 %v696_v53 }
 0x1cb   :  { %v697_v58 = vmax.f32 %v643_v56, 0.0  ;;  %v658_v60 = vadd.f32 %v1287_v57, %v1704_v37 }
 0x1cc   :  { %v652_v61 = vpop.f32.mrf.mxu1 }
 0x1cd   :  { %v653_v62 = vadd.f32 %v1704_v37, %v652_v61  ;;  %1362 = vmatprep.mubr.f32.mxu0 %v697_v58  ;;  %v700_v2 = vmax.f32 %v658_v60, 0.0 }
 0x1ce   :  { %v1290_v63 = vpop.f32.mrf.mxu1  ;;  %1363 = vmatmul.mubr.f32.gmra.mxu0 %v698_v59 }
 0x1cf   :  { %v699_v0 = vmax.f32 %v653_v62, 0.0  ;;  %v668_v3 = vadd.f32 %v1290_v63, %v1704_v37 }
 0x1d0   :  { %v662_v4 = vpop.f32.mrf.mxu1 }
 0x1d1   :  { %v663_v6 = vadd.f32 %v1704_v37, %v662_v4  ;;  %1365 = vmatprep.mubr.f32.mxu0 %v699_v0  ;;  %v702_v8 = vmax.f32 %v668_v3, 0.0 }
 0x1d2   :  { %1366 = vmatmul.mubr.f32.gmra.mxu0 %v700_v2 }
 0x1d3   :  { %v701_v7 = vmax.f32 %v663_v6, 0.0 }
 0x1d5   :  { %1368 = vmatprep.mubr.f32.mxu0 %v701_v7 }
 0x1d6   :  { %1369 = vmatmul.mubr.f32.gmra.mxu0 %v702_v8 }
 0x25a   :  { %v1325_v10 = vpop.f32.mrf.mxu0 }
 0x25b   :  { %v798_v5 = vadd.f32 %v1325_v10, %v1741_v9 }
 0x25c   :  { %v792_v11 = vpop.f32.mrf.mxu0 }
 0x25d   :  { %953 = vst.msk [vmem:[%s1910_s7 + $0x8] sm:$0xff] %vm951_vm1, %v798_v5  ;;  %v793_v37 = vadd.f32 %v1741_v9, %v792_v11 }
 0x25e   :  { %v1328_v12 = vpop.f32.mrf.mxu0 }
 0x25f   :  { %952 = vst.msk [vmem:[%s1910_s7] sm:$0xff] %vm951_vm1, %v793_v37  ;;  %v808_v14 = vadd.f32 %v1328_v12, %v1741_v9 }
 0x260   :  { %v802_v15 = vpop.f32.mrf.mxu0 }
 0x261   :  { %955 = vst.msk [vmem:[%s1910_s7 + $0x18] sm:$0xff] %vm951_vm1, %v808_v14  ;;  %v803_v16 = vadd.f32 %v1741_v9, %v802_v15 }
 0x262   :  { %v1331_v13 = vpop.f32.mrf.mxu0 }
 0x263   :  { %954 = vst.msk [vmem:[%s1910_s7 + $0x10] sm:$0xff] %vm951_vm1, %v803_v16  ;;  %v818_v17 = vadd.f32 %v1331_v13, %v1741_v9 }
 0x264   :  { %v812_v18 = vpop.f32.mrf.mxu0 }
 0x265   :  { %957 = vst.msk [vmem:[%s1910_s7 + $0x28] sm:$0xff] %vm951_vm1, %v818_v17  ;;  %v813_v19 = vadd.f32 %v1741_v9, %v812_v18 }
 0x266   :  { %v1334_v20 = vpop.f32.mrf.mxu0 }
 0x267   :  { %956 = vst.msk [vmem:[%s1910_s7 + $0x20] sm:$0xff] %vm951_vm1, %v813_v19  ;;  %v828_v22 = vadd.f32 %v1334_v20, %v1741_v9 }
 0x268   :  { %v822_v21 = vpop.f32.mrf.mxu0 }
 0x269   :  { %959 = vst.msk [vmem:[%s1910_s7 + $0x38] sm:$0xff] %vm951_vm1, %v828_v22  ;;  %v823_v23 = vadd.f32 %v1741_v9, %v822_v21 }
 0x26a   :  { %v1337_v24 = vpop.f32.mrf.mxu0 }
 0x26b   :  { %958 = vst.msk [vmem:[%s1910_s7 + $0x30] sm:$0xff] %vm951_vm1, %v823_v23  ;;  %v838_v25 = vadd.f32 %v1337_v24, %v1741_v9 }
 0x26c   :  { %v832_v26 = vpop.f32.mrf.mxu0 }
 0x26d   :  { %961 = vst.msk [vmem:[%s1910_s7 + $0x48] sm:$0xff] %vm951_vm1, %v838_v25  ;;  %v833_v27 = vadd.f32 %v1741_v9, %v832_v26 }
 0x26e   :  { %v1340_v28 = vpop.f32.mrf.mxu0 }
 0x26f   :  { %960 = vst.msk [vmem:[%s1910_s7 + $0x40] sm:$0xff] %vm951_vm1, %v833_v27  ;;  %v848_v29 = vadd.f32 %v1340_v28, %v1741_v9 }
 0x270   :  { %v842_v30 = vpop.f32.mrf.mxu0 }
 0x271   :  { %963 = vst.msk [vmem:[%s1910_s7 + $0x58] sm:$0xff] %vm951_vm1, %v848_v29  ;;  %v843_v31 = vadd.f32 %v1741_v9, %v842_v30 }
 0x272   :  { %v1343_v32 = vpop.f32.mrf.mxu0 }
 0x273   :  { %962 = vst.msk [vmem:[%s1910_s7 + $0x50] sm:$0xff] %vm951_vm1, %v843_v31  ;;  %v858_v33 = vadd.f32 %v1343_v32, %v1741_v9 }
 0x274   :  { %v852_v34 = vpop.f32.mrf.mxu0 }
 0x275   :  { %965 = vst.msk [vmem:[%s1910_s7 + $0x68] sm:$0xff] %vm951_vm1, %v858_v33  ;;  %v853_v35 = vadd.f32 %v1741_v9, %v852_v34 }
 0x276   :  { %v1346_v36 = vpop.f32.mrf.mxu0 }
 0x277   :  { %964 = vst.msk [vmem:[%s1910_s7 + $0x60] sm:$0xff] %vm951_vm1, %v853_v35  ;;  %v868_v1 = vadd.f32 %v1346_v36, %v1741_v9 }
 0x278   :  { %v862_v38 = vpop.f32.mrf.mxu0 }
 0x279   :  { %967 = vst.msk [vmem:[%s1910_s7 + $0x78] sm:$0xff] %vm951_vm1, %v868_v1  ;;  %v863_v39 = vadd.f32 %v1741_v9, %v862_v38 }
 0x27a   :  { %v1349_v40 = vpop.f32.mrf.mxu0 }
 0x27b   :  { %966 = vst.msk [vmem:[%s1910_s7 + $0x70] sm:$0xff] %vm951_vm1, %v863_v39  ;;  %v878_v41 = vadd.f32 %v1349_v40, %v1741_v9 }
 0x27c   :  { %v872_v42 = vpop.f32.mrf.mxu0 }
 0x27d   :  { %969 = vst.msk [vmem:[%s1910_s7 + $0x88] sm:$0xff] %vm951_vm1, %v878_v41  ;;  %v873_v43 = vadd.f32 %v1741_v9, %v872_v42 }
 0x27e   :  { %v1352_v44 = vpop.f32.mrf.mxu0 }
 0x27f   :  { %968 = vst.msk [vmem:[%s1910_s7 + $0x80] sm:$0xff] %vm951_vm1, %v873_v43  ;;  %v888_v45 = vadd.f32 %v1352_v44, %v1741_v9 }
 0x280   :  { %v882_v46 = vpop.f32.mrf.mxu0 }
 0x281   :  { %971 = vst.msk [vmem:[%s1910_s7 + $0x98] sm:$0xff] %vm951_vm1, %v888_v45  ;;  %v883_v47 = vadd.f32 %v1741_v9, %v882_v46 }
 0x282   :  { %v1355_v48 = vpop.f32.mrf.mxu0 }
 0x283   :  { %970 = vst.msk [vmem:[%s1910_s7 + $0x90] sm:$0xff] %vm951_vm1, %v883_v47  ;;  %v898_v49 = vadd.f32 %v1355_v48, %v1741_v9 }
 0x284   :  { %v892_v50 = vpop.f32.mrf.mxu0 }
 0x285   :  { %973 = vst.msk [vmem:[%s1910_s7 + $0xa8] sm:$0xff] %vm951_vm1, %v898_v49  ;;  %v893_v51 = vadd.f32 %v1741_v9, %v892_v50 }
 0x286   :  { %v1358_v52 = vpop.f32.mrf.mxu0 }
 0x287   :  { %972 = vst.msk [vmem:[%s1910_s7 + $0xa0] sm:$0xff] %vm951_vm1, %v893_v51  ;;  %v908_v53 = vadd.f32 %v1358_v52, %v1741_v9 }
 0x288   :  { %v902_v54 = vpop.f32.mrf.mxu0 }
 0x289   :  { %975 = vst.msk [vmem:[%s1910_s7 + $0xb8] sm:$0xff] %vm951_vm1, %v908_v53  ;;  %v903_v55 = vadd.f32 %v1741_v9, %v902_v54 }
 0x28a   :  { %v1361_v56 = vpop.f32.mrf.mxu0 }
 0x28b   :  { %974 = vst.msk [vmem:[%s1910_s7 + $0xb0] sm:$0xff] %vm951_vm1, %v903_v55  ;;  %v918_v57 = vadd.f32 %v1361_v56, %v1741_v9 }
 0x28c   :  { %v912_v58 = vpop.f32.mrf.mxu0 }
 0x28d   :  { %977 = vst.msk [vmem:[%s1910_s7 + $0xc8] sm:$0xff] %vm951_vm1, %v918_v57  ;;  %v913_v59 = vadd.f32 %v1741_v9, %v912_v58 }
 0x28e   :  { %v1364_v60 = vpop.f32.mrf.mxu0 }
 0x28f   :  { %976 = vst.msk [vmem:[%s1910_s7 + $0xc0] sm:$0xff] %vm951_vm1, %v913_v59  ;;  %v928_v61 = vadd.f32 %v1364_v60, %v1741_v9 }
 0x290   :  { %v922_v62 = vpop.f32.mrf.mxu0 }
 0x291   :  { %979 = vst.msk [vmem:[%s1910_s7 + $0xd8] sm:$0xff] %vm951_vm1, %v928_v61  ;;  %v923_v63 = vadd.f32 %v1741_v9, %v922_v62 }
 0x292   :  { %v1367_v0 = vpop.f32.mrf.mxu0 }
 0x293   :  { %978 = vst.msk [vmem:[%s1910_s7 + $0xd0] sm:$0xff] %vm951_vm1, %v923_v63  ;;  %v938_v2 = vadd.f32 %v1367_v0, %v1741_v9 }
 0x294   :  { %v932_v3 = vpop.f32.mrf.mxu0 }
 0x295   :  { %981 = vst.msk [vmem:[%s1910_s7 + $0xe8] sm:$0xff] %vm951_vm1, %v938_v2  ;;  %v933_v4 = vadd.f32 %v1741_v9, %v932_v3 }
 0x296   :  { %v1370_v6 = vpop.f32.mrf.mxu0 }
 0x297   :  { %980 = vst.msk [vmem:[%s1910_s7 + $0xe0] sm:$0xff] %vm951_vm1, %v933_v4  ;;  %v948_v7 = vadd.f32 %v1370_v6, %v1741_v9 }
 0x298   :  { %v942_v8 = vpop.f32.mrf.mxu0 }
 0x299   :  { %983 = vst.msk [vmem:[%s1910_s7 + $0xf8] sm:$0xff] %vm951_vm1, %v948_v7  ;;  %v943_v10 = vadd.f32 %v1741_v9, %v942_v8 }
 0x29b   :  { %982 = vst.msk [vmem:[%s1910_s7 + $0xf0] sm:$0xff] %vm951_vm1, %v943_v10 }

</bundles_post_ra>
